<compile_context>
chip_gen: v6e
topology: v6e:2x2x1
jax: 0.10.0
libtpu: 0.0.40
codegen_flags: <defaults>
</compile_context>

<pallas_src>
import functools

import jax
import jax.numpy as jnp
from jax import lax
from jax.experimental import pallas as pl
from jax.experimental.pallas import tpu as pltpu


def _cdiv(a, b):
    return -(-a // b)


def _round_up(a, b):
    return _cdiv(a, b) * b


def _row_mean(x2, inv_c, use_mxu):
    """Per-row mean over the channel (lane) axis of a (TM, C) f32 tile."""
    if use_mxu:
        # Narrow C: cross-lane XLU reduce amortizes over very few vregs; use the otherwise-idle
        # MXU as a matvec reducer instead (frees the XLU slot in this mem-bound loop).
        ones = jnp.ones((x2.shape[-1], 1), jnp.float32)
        s = jnp.dot(x2, ones, preferred_element_type=jnp.float32)
    else:
        s = jnp.sum(x2, axis=-1, keepdims=True)
    return s * inv_c


def _stats_kernel(x_ref, acc_ref, *, eps_gs, inv_c, tm, m_real, tiles_per_part, use_mxu):
    """Pass 1: accumulate per-channel sum of xg^2 = x^2 / (row_m2 + eps_gs)."""
    i = pl.program_id(1)

    @pl.when(i == 0)
    def _init():
        acc_ref[...] = jnp.zeros_like(acc_ref)

    tile_idx = pl.program_id(0) * tiles_per_part + i
    rows_left = m_real - tile_idx * tm                        # < TM only on the ragged tail tile
    row_ids = lax.broadcasted_iota(jnp.int32, (tm, 1), 0)
    x = x_ref[...].astype(jnp.float32)
    x2 = jnp.where(row_ids < rows_left, x * x, 0.0)           # tail rows contribute exactly zero
    m2 = _row_mean(x2, inv_c, use_mxu)                        # (TM, 1)
    contrib = x2 * (1.0 / (m2 + eps_gs))                      # (TM, C); masked rows stay zero
    acc_ref[...] += jnp.sum(contrib, axis=0, keepdims=True)   # (1, C) resident accumulator


def _normalize_kernel(x_ref, scale_ref, bias_ref, y_ref, *, eps_gs, inv_c, use_mxu):
    """Pass 2: y = (x * rsqrt(row_m2 + eps_gs)) * scale + bias (scale folded in wrapper)."""
    x = x_ref[...].astype(jnp.float32)
    m2 = _row_mean(x * x, inv_c, use_mxu)                     # (TM, 1)
    inv_row = lax.rsqrt(m2 + eps_gs)
    # Tail rows past M compute garbage here; their stores are dropped by Pallas.
    y_ref[...] = ((x * inv_row) * scale_ref[...] + bias_ref[...]).astype(y_ref.dtype)


def _fused_kernel(x_ref, w_ref, b_ref, y_ref, var_ref, *, eps, eps_gs, inv_c, inv_m, use_mxu):
    """Single-read fast path: whole activation resident in VMEM; stats + normalize fused."""
    x = x_ref[...].astype(jnp.float32)
    m2 = _row_mean(x * x, inv_c, use_mxu)                     # (M, 1)
    xg = x * lax.rsqrt(m2 + eps_gs)
    var = jnp.sum(xg * xg, axis=0, keepdims=True) * inv_m     # (1, C)
    var_ref[...] = var
    scale = w_ref[...] * lax.rsqrt(var + eps)
    y_ref[...] = (xg * scale + b_ref[...]).astype(y_ref.dtype)


def mask_powernorm_forward(x_tbc, weight, bias, *, eps=1e-5, eps_gs=1e-5,
                           group_num=1, pad_mask=None, tm=None, allow_fused=True):
    """Forward of MaskPowerNorm (training, pad_mask=None, group_num=1, iteration 1).

    x_tbc : (T, B, C) float array.  weight, bias : (C,) float arrays.
    Returns (output (T, B, C), running_phi (1, C, 1, 1)).
    """
    if pad_mask is not None:
        raise NotImplementedError("pad_mask (masked-row statistics) is not implemented")
    if group_num != 1:
        raise NotImplementedError("group_num != 1 is not implemented")

    T, B, C = x_tbc.shape
    M = T * B
    x2d = x_tbc.reshape(M, C)                      # free reshape: no pad / slice copies
    in_itemsize = jnp.dtype(x_tbc.dtype).itemsize
    out_itemsize = in_itemsize
    use_mxu = C <= 256
    inv_c = 1.0 / float(C)
    inv_m = 1.0 / float(M)

    w_row = weight.astype(jnp.float32).reshape(1, C)
    b_row = bias.astype(jnp.float32).reshape(1, C)

    # ---- hardware-aware budgets ----
    try:
        vmem_bytes = int(getattr(pltpu.get_tpu_info(), "vmem_capacity_bytes", 64 << 20))
    except Exception:
        vmem_bytes = 64 << 20                      # conservative (v7x-sized) fallback
    big_vmem = vmem_bytes >= (100 << 20)           # v5e/v6e: 128 MiB; v7x: 64 MiB per TC
    norm_tile_budget = (16 << 20) if big_vmem else (8 << 20)
    stats_tile_budget = (24 << 20) if big_vmem else (16 << 20)
    fused_cap = (40 << 20) if big_vmem else (12 << 20)
    row_align = {4: 8, 2: 16, 1: 32}.get(in_itemsize, 8)   # dtype-aware sublane packing

    # ---- fused single-call fast path: one HBM read of x instead of two ----
    fused_bytes = (in_itemsize + out_itemsize + 3 * 4) * M * C
    if allow_fused and tm is None and fused_bytes <= fused_cap:
        fused = functools.partial(_fused_kernel, eps=eps, eps_gs=eps_gs,
                                  inv_c=inv_c, inv_m=inv_m, use_mxu=use_mxu)
        y2d, var_row = pl.pallas_call(
            fused,
            grid=(1,),
            in_specs=[
                pl.BlockSpec((M, C), lambda i: (0, 0)),
                pl.BlockSpec((1, C), lambda i: (0, 0)),
                pl.BlockSpec((1, C), lambda i: (0, 0)),
            ],
            out_specs=(
                pl.BlockSpec((M, C), lambda i: (0, 0)),
                pl.BlockSpec((1, C), lambda i: (0, 0)),
            ),
            out_shape=(
                jax.ShapeDtypeStruct((M, C), x_tbc.dtype),
                jax.ShapeDtypeStruct((1, C), jnp.float32),
            ),
            compiler_params=pltpu.CompilerParams(
                dimension_semantics=("arbitrary",),
                vmem_limit_bytes=int(min(vmem_bytes * 3 // 4,
                                         max(32 << 20, 3 * fused_bytes))),
            ),
        )(x2d, w_row, b_row)
        return y2d.reshape(T, B, C), var_row.reshape(1, C, 1, 1)

    # ---- tiled two-pass path ----
    def _pick_tm(budget):
        rows = budget // max(1, C * in_itemsize)
        rows = (rows // row_align) * row_align
        return max(row_align, min(rows, 16384, _round_up(M, row_align)))

    if tm is not None:
        tm_stats = tm_norm = max(row_align, _round_up(int(tm), row_align))
    else:
        tm_stats = _pick_tm(stats_tile_budget)     # pass 1 only double-buffers x -> bigger tiles
        tm_norm = _pick_tm(norm_tile_budget)

    n_tiles_stats = _cdiv(M, tm_stats)
    # Two partial accumulators let v7x's two TensorCores both stream pass 1; harmless elsewhere.
    n_partials = 2 if (n_tiles_stats >= 4 and n_tiles_stats % 2 == 0) else 1
    tiles_per_part = n_tiles_stats // n_partials
    n_tiles_norm = _cdiv(M, tm_norm)

    need_pass1 = 2 * tm_stats * C * in_itemsize + 2 * n_partials * C * 4
    need_pass2 = 2 * tm_norm * C * (in_itemsize + out_itemsize) + 4 * C * 4
    vmem_limit = int(min(vmem_bytes * 3 // 4,
                         max(32 << 20, need_pass1 + (6 << 20), need_pass2 + (6 << 20))))

    # ---- pass 1: per-channel variance of the group-scaled activations ----
    stats = functools.partial(
        _stats_kernel, eps_gs=eps_gs, inv_c=inv_c, tm=tm_stats, m_real=M,
        tiles_per_part=tiles_per_part, use_mxu=use_mxu)
    acc = pl.pallas_call(
        stats,
        grid=(n_partials, tiles_per_part),
        in_specs=[pl.BlockSpec((tm_stats, C),
                               lambda p, i: (p * tiles_per_part + i, 0))],
        out_specs=pl.BlockSpec((None, 1, C), lambda p, i: (p, 0, 0)),   # resident per-partial acc
        out_shape=jax.ShapeDtypeStruct((n_partials, 1, C), jnp.float32),
        compiler_params=pltpu.CompilerParams(
            dimension_semantics=("parallel", "arbitrary"),
            vmem_limit_bytes=vmem_limit,
        ),
    )(x2d)

    # Tiny XLA ops: combine partials, fold weight into a single per-channel scale.
    var_row = (acc.reshape(n_partials, C).sum(axis=0) * inv_m).reshape(1, C)
    scale_row = w_row * lax.rsqrt(var_row + eps)

    # ---- pass 2: normalize + affine, streamed over row tiles (megacore-parallel) ----
    normalize = functools.partial(_normalize_kernel, eps_gs=eps_gs, inv_c=inv_c, use_mxu=use_mxu)
    y2d = pl.pallas_call(
        normalize,
        grid=(n_tiles_norm,),
        in_specs=[
            pl.BlockSpec((tm_norm, C), lambda i: (i, 0)),
            pl.BlockSpec((1, C), lambda i: (0, 0)),
            pl.BlockSpec((1, C), lambda i: (0, 0)),
        ],
        out_specs=pl.BlockSpec((tm_norm, C), lambda i: (i, 0)),
        out_shape=jax.ShapeDtypeStruct((M, C), x_tbc.dtype),
        compiler_params=pltpu.CompilerParams(
            dimension_semantics=("parallel",),
            vmem_limit_bytes=vmem_limit,
        ),
    )(x2d, scale_row, b_row)

    return y2d.reshape(T, B, C), var_row.reshape(1, C, 1, 1)


def _reference_forward(x_tbc, weight, bias, eps=1e-5, eps_gs=1e-5):
    """Pure-JAX reference mirroring the PyTorch forward (same assumptions)."""
    T, B, C = x_tbc.shape
    x = x_tbc.astype(jnp.float32)
    m2 = jnp.mean(x * x, axis=2, keepdims=True)
    xg = x / jnp.sqrt(m2 + eps_gs)
    mask_input = xg.reshape(-1, C)
    var = jnp.mean(mask_input * mask_input, axis=0)          # (C,)
    z = xg / jnp.sqrt(var + eps)[None, None, :]
    y = weight[None, None, :] * z + bias[None, None, :]
    return y.astype(x_tbc.dtype), var.reshape(1, C, 1, 1)


if __name__ == "__main__":
    # Case 1: module-default params (weight=1, bias=0); small shape -> fused single-call path.
    T, B, C = 8, 2, 32
    x = jax.random.normal(jax.random.PRNGKey(0), (T, B, C), dtype=jnp.float32)
    weight = jnp.ones((C,), dtype=jnp.float32)
    bias = jnp.zeros((C,), dtype=jnp.float32)
    y, phi = mask_powernorm_forward(x, weight, bias)
    jax.block_until_ready((y, phi))
    y_ref, phi_ref = _reference_forward(x, weight, bias)
    assert jnp.allclose(y, y_ref, atol=1e-5, rtol=1e-5), "fused output mismatch"
    assert jnp.allclose(phi, phi_ref, atol=1e-5, rtol=1e-5), "fused running_phi mismatch"

    # Case 2: tiled path with ragged row tail (M=36, TM=8 -> 5 tiles, last tile masked) and
    # non-128 channel count handled without padding.
    T2, B2, C2 = 12, 3, 48
    x2 = jax.random.normal(jax.random.PRNGKey(1), (T2, B2, C2), dtype=jnp.float32)
    w2 = jax.random.normal(jax.random.PRNGKey(2), (C2,), dtype=jnp.float32)
    b2 = jax.random.normal(jax.random.PRNGKey(3), (C2,), dtype=jnp.float32)
    y2, phi2 = mask_powernorm_forward(x2, w2, b2, tm=8, allow_fused=False)
    jax.block_until_ready((y2, phi2))
    y2_ref, phi2_ref = _reference_forward(x2, w2, b2)
    assert jnp.allclose(y2, y2_ref, atol=1e-4, rtol=1e-4), "tiled output mismatch"
    assert jnp.allclose(phi2, phi2_ref, atol=1e-4, rtol=1e-4), "tiled running_phi mismatch"

    # Case 3: bf16 activations + two-partial pass-1 accumulation (4 tiles -> 2 partials).
    T3, B3, C3 = 16, 4, 64
    x3 = jax.random.normal(jax.random.PRNGKey(4), (T3, B3, C3), dtype=jnp.float32).astype(jnp.bfloat16)
    w3 = jax.random.normal(jax.random.PRNGKey(5), (C3,), dtype=jnp.float32)
    b3 = jax.random.normal(jax.random.PRNGKey(6), (C3,), dtype=jnp.float32)
    y3, phi3 = mask_powernorm_forward(x3, w3, b3, tm=16, allow_fused=False)
    jax.block_until_ready((y3, phi3))
    y3_ref, phi3_ref = _reference_forward(x3, w3, b3)
    assert jnp.allclose(y3.astype(jnp.float32), y3_ref.astype(jnp.float32),
                        atol=5e-2, rtol=5e-2), "bf16 tiled output mismatch"
    assert jnp.allclose(phi3, phi3_ref, atol=1e-3, rtol=1e-3), "bf16 running_phi mismatch"

    # Case 4: automatic tile selection (no forced tm), fused path disabled to exercise two-pass.
    T4, B4, C4 = 64, 8, 256
    x4 = jax.random.normal(jax.random.PRNGKey(7), (T4, B4, C4), dtype=jnp.float32)
    w4 = jax.random.normal(jax.random.PRNGKey(8), (C4,), dtype=jnp.float32)
    b4 = jax.random.normal(jax.random.PRNGKey(9), (C4,), dtype=jnp.float32)
    y4, phi4 = mask_powernorm_forward(x4, w4, b4, allow_fused=False)
    jax.block_until_ready((y4, phi4))
    y4_ref, phi4_ref = _reference_forward(x4, w4, b4)
    assert jnp.allclose(y4, y4_ref, atol=1e-4, rtol=1e-4), "auto-tiled output mismatch"
    assert jnp.allclose(phi4, phi4_ref, atol=1e-4, rtol=1e-4), "auto-tiled running_phi mismatch"

    print("KERNEL_OK")
</pallas_src>

<mosaic_0001>
module attributes {stable_mosaic.version = 11 : i64} {
  func.func @_fused_kernel(%arg0: i32, %arg1: memref<16x32xf32, #tpu.memory_space<vmem>>, %arg2: memref<1x32xf32, #tpu.memory_space<vmem>>, %arg3: memref<1x32xf32, #tpu.memory_space<vmem>>, %arg4: memref<16x32xf32, #tpu.memory_space<vmem>>, %arg5: memref<1x32xf32, #tpu.memory_space<vmem>>) attributes {dimension_semantics = [#tpu.dimension_semantics<arbitrary>], iteration_bounds = array<i64: 1>, scalar_prefetch = 0 : i64, scratch_operands = 0 : i64, tpu.core_type = #tpu.core_type<tc>, window_params = [{pipeline_mode = #tpu.pipeline_mode<synchronous>, transform_indices = @transform_0, window_bounds = array<i64: 16, 32>}, {pipeline_mode = #tpu.pipeline_mode<synchronous>, transform_indices = @transform_1, window_bounds = array<i64: 1, 32>}, {pipeline_mode = #tpu.pipeline_mode<synchronous>, transform_indices = @transform_2, window_bounds = array<i64: 1, 32>}, {pipeline_mode = #tpu.pipeline_mode<synchronous>, transform_indices = @transform_3, window_bounds = array<i64: 16, 32>}, {pipeline_mode = #tpu.pipeline_mode<synchronous>, transform_indices = @transform_4, window_bounds = array<i64: 1, 32>}]} {
    %c0 = arith.constant 0 : index
    %c0_0 = arith.constant 0 : index
    %0 = vector.load %arg1[%c0, %c0_0] : memref<16x32xf32, #tpu.memory_space<vmem>>, vector<16x32xf32>
    %1 = arith.mulf %0, %0 : vector<16x32xf32>
    %cst = arith.constant 1.000000e+00 : f32
    %2 = vector.broadcast %cst : f32 to vector<32x1xf32>
    %cst_1 = arith.constant dense<0.000000e+00> : vector<16x1xf32>
    %3 = tpu.matmul %1, %2, %cst_1 {dimension_numbers = #tpu.dot_dimension_numbers<[1], [0], [0], [1], [0, 0, 1, 1], [], []>} : vector<16x32xf32>, vector<32x1xf32>, vector<16x1xf32> -> vector<16x1xf32>
    %cst_2 = arith.constant 3.125000e-02 : f32
    %4 = vector.broadcast %cst_2 : f32 to vector<16x1xf32>
    %5 = arith.mulf %3, %4 : vector<16x1xf32>
    %cst_3 = arith.constant 9.99999974E-6 : f32
    %6 = vector.broadcast %cst_3 : f32 to vector<16x1xf32>
    %7 = arith.addf %5, %6 : vector<16x1xf32>
    %8 = math.rsqrt %7 : vector<16x1xf32>
    %9 = vector.broadcast %8 : vector<16x1xf32> to vector<16x32xf32>
    %10 = arith.mulf %0, %9 : vector<16x32xf32>
    %11 = arith.mulf %10, %10 : vector<16x32xf32>
    %cst_4 = arith.constant dense<0.000000e+00> : vector<32xf32>
    %12 = vector.multi_reduction <add>, %11, %cst_4 [0] : vector<16x32xf32> to vector<32xf32>
    %13 = vector.shape_cast %12 : vector<32xf32> to vector<1x32xf32>
    %cst_5 = arith.constant 6.250000e-02 : f32
    %14 = vector.broadcast %cst_5 : f32 to vector<1x32xf32>
    %15 = arith.mulf %13, %14 : vector<1x32xf32>
    %c0_6 = arith.constant 0 : index
    %c0_7 = arith.constant 0 : index
    %16 = vector.load %arg5[%c0_6, %c0_7] : memref<1x32xf32, #tpu.memory_space<vmem>>, vector<1x32xf32>
    tpu.vector_store %arg5[%c0_6, %c0_7], %15 {strides = array<i32>} : memref<1x32xf32, #tpu.memory_space<vmem>>, vector<1x32xf32>,
    %c0_8 = arith.constant 0 : index
    %c0_9 = arith.constant 0 : index
    %17 = vector.load %arg2[%c0_8, %c0_9] : memref<1x32xf32, #tpu.memory_space<vmem>>, vector<1x32xf32>
    %cst_10 = arith.constant 9.99999974E-6 : f32
    %18 = vector.broadcast %cst_10 : f32 to vector<1x32xf32>
    %19 = arith.addf %15, %18 : vector<1x32xf32>
    %20 = math.rsqrt %19 : vector<1x32xf32>
    %21 = arith.mulf %17, %20 : vector<1x32xf32>
    %22 = vector.broadcast %21 : vector<1x32xf32> to vector<16x32xf32>
    %23 = arith.mulf %10, %22 : vector<16x32xf32>
    %c0_11 = arith.constant 0 : index
    %c0_12 = arith.constant 0 : index
    %24 = vector.load %arg3[%c0_11, %c0_12] : memref<1x32xf32, #tpu.memory_space<vmem>>, vector<1x32xf32>
    %25 = vector.broadcast %24 : vector<1x32xf32> to vector<16x32xf32>
    %26 = arith.addf %23, %25 : vector<16x32xf32>
    %c0_13 = arith.constant 0 : index
    %c0_14 = arith.constant 0 : index
    %27 = vector.load %arg4[%c0_13, %c0_14] : memref<16x32xf32, #tpu.memory_space<vmem>>, vector<16x32xf32>
    tpu.vector_store %arg4[%c0_13, %c0_14], %26 {strides = array<i32>} : memref<16x32xf32, #tpu.memory_space<vmem>>, vector<16x32xf32>,
    return
  }
  func.func @transform_0(%arg0: i32) -> (i32, i32) {
    %c0_i32 = arith.constant 0 : i32
    %c0_i32_0 = arith.constant 0 : i32
    %c0_i32_1 = arith.constant 0 : i32
    return %c0_i32, %c0_i32_0 : i32, i32
  }
  func.func @transform_1(%arg0: i32) -> (i32, i32) {
    %c0_i32 = arith.constant 0 : i32
    %c0_i32_0 = arith.constant 0 : i32
    %c0_i32_1 = arith.constant 0 : i32
    return %c0_i32, %c0_i32_0 : i32, i32
  }
  func.func @transform_2(%arg0: i32) -> (i32, i32) {
    %c0_i32 = arith.constant 0 : i32
    %c0_i32_0 = arith.constant 0 : i32
    %c0_i32_1 = arith.constant 0 : i32
    return %c0_i32, %c0_i32_0 : i32, i32
  }
  func.func @transform_3(%arg0: i32) -> (i32, i32) {
    %c0_i32 = arith.constant 0 : i32
    %c0_i32_0 = arith.constant 0 : i32
    %c0_i32_1 = arith.constant 0 : i32
    return %c0_i32, %c0_i32_0 : i32, i32
  }
  func.func @transform_4(%arg0: i32) -> (i32, i32) {
    %c0_i32 = arith.constant 0 : i32
    %c0_i32_0 = arith.constant 0 : i32
    %c0_i32_1 = arith.constant 0 : i32
    return %c0_i32, %c0_i32_0 : i32, i32
  }
}

</mosaic_0001>

<bundles_post_ra>
// kernel: tpu_custom_call.1
= control target key start
LH: loop header
LB: loop body
LE: loop exit
PB: predicated region body
PF: predicated region fallthrough
CT: control target
= control target key end

     0   :  { %10 = vsyncpa [#allocation3], 0  ;;  %s363_s0 = inlined_call_operand.hbm [shape: f32[16,32], index: 0, kind: input, shape index: {}]   ;;  %s364_s1 = inlined_call_operand.vmem [shape: f32[1,32], index: 1, kind: input, shape index: {}]   ;;  %s365_s2 = inlined_call_operand.vmem [shape: f32[1,32], index: 2, kind: input, shape index: {}]   ;;  %s366_s3 = inlined_call_operand.hbm [shape: f32[16,32], index: 3, kind: output, shape index: {0}]   ;;  %s367_s4 = inlined_call_operand.hbm [shape: f32[1,32], index: 4, kind: output, shape index: {1}]  }
   0x1   :  { %11 = vsyncpa [#allocation4], 0 }
   0x2   :  { %12 = vsyncpa [#allocation7], 0  ;;  %s304_s15 = smov [#allocation2]  }
   0x3   :  { %s18_s16 = sshll.u32 %s304_s15, 4  ;;  %s19_s16 = int_to_ptr.vmem [resolvable:$true] %s18_s16 }
   0x4   :  { %s246_s17 = scalar_lea.vmem %s19_s16, 256  ;;  %p251_p1 = scmp.lt.s32.totalorder %s19_s16, %s19_s16 }
   0x5   :  { %p247_p0 = scmp.ne.s32.totalorder %s19_s16, %s246_s17  ;;  %p252_p2 = scmp.lt.s32.totalorder %s246_s17, %s246_s17 }
   0x7   :  { %p253_p3 = por %p252_p2, %p251_p1 }
   0x9   :  { %p254_p4 = pnand %p253_p3, %p247_p0 }
   0xb   :  { %257 = shalt.err (!%p254_p4)
}
   0xc   :  { %s305_s18 = smov 128   ;;  %s306_s19 = smov 8  }
   0xd   :  { %24 = dma.hbm_to_vmem [thread:$0]  %s363_s0, 256, %s19_s16, [#allocation3], %s305_s18, %s305_s18, %s306_s19  }
   0xe   :  { %298 = dma.done.wait [#allocation3], 256  }
   0xf   :  { %299 = vsyncadd [#allocation3], 4294967040  ;;  %v307_v0 = vmov 1.0   ;;  %v32_v1 = vld [vmem:[#allocation2] sm:$0xff]  ;;  %vm36_vm0 = vcmask 261120   ;;  %v33_v2 = vld [vmem:[#allocation2 + $0x8] sm:$0xff] }
  0x10   :  { %213 = vmatprep.subr.mxu0 %v307_v0  ;;  %v34_v3 = vmul.f32 %v32_v1, %v32_v1  ;;  %v35_v4 = vmul.f32 %v33_v2, %v33_v2  ;;  %v308_v5 = vmov 0   ;;  %s309_s0 = smov [#allocation6]   ;;  %vm148_vm1 = vcmask 253952  }
  0x11   :  { %214 = vmatpush3.msra.mxu0 %v307_v0  ;;  %231 = vset.pattern.permute.xlu0 %v308_v5  ;;  %s191_s22 = sshll.u32 %s309_s0, 4  ;;  %s192_s22 = int_to_ptr.vmem [resolvable:$true] %s191_s22 }
  0x12   :  { %215 = vmatprep.subr.mxu0 %v307_v0  ;;  %221 = vmatprep.mubr.msk.f32.mxu0 %vm36_vm0, %v34_v3  ;;  %s258_s23 = scalar_lea.vmem %s192_s22, 16  ;;  %s262_s24 = scalar_lea.vmem %s192_s22, 32 }
  0x13   :  { %216 = vmatpush3.msra.mxu0 %v307_v0  ;;  %p259_p5 = scmp.ne.s32.totalorder %s192_s22, %s258_s23  ;;  %p263_p6 = scmp.lt.s32.totalorder %s192_s22, %s192_s22 }
  0x14   :  { %217 = vmatprep.subr.mxu0 %v307_v0  ;;  %p264_p7 = scmp.lt.s32.totalorder %s262_s24, %s258_s23 }
  0x15   :  { %218 = vmatpush3.msra.mxu0 %v307_v0 }
  0x16   :  { %219 = vmatprep.subr.mxu0 %v307_v0  ;;  %p265_p8 = por %p264_p7, %p263_p6 }
  0x17   :  { %220 = vmatpush3.msra.mxu0 %v307_v0 }
  0x18   :  { %222 = vmatmul.mubr.msk.f32.vlgmr.msra.gmra.mxu0 %vm36_vm0, %v35_v4  ;;  %p266_p9 = pnand %p265_p8, %p259_p5 }
  0xd8   :  { %v223_v6 = vpop.f32.mrf.mxu0 }
  0xd9   :  { %v119_v8 = vmul.f32 0.03125, %v223_v6 }
  0xda   :  { %v109_v7 = vpop.f32.mrf.mxu0 }
  0xdb   :  { %v118_v9 = vmul.f32 0.03125, %v109_v7  ;;  %v121_v11 = vadd.f32 1e-05, %v119_v8 }
  0xdd   :  { %v120_v10 = vadd.f32 1e-05, %v118_v9 }
  0xdf   :  { %232 = vrsqrt.f32 %v120_v10 }
  0xe0   :  { %234 = vrsqrt.f32 %v121_v11 }
  0xec   :  { %v233_v12 = vpop.eup %232 }
  0xed   :  { %126 = vperm.xlu0 %231, %v233_v12   ;;  %v235_v13 = vpop.eup %234 }
  0xf1   :  { %131 = vperm.xlu0 %231, %v235_v13  }
 0x168   :  { %v127_v14 = vpop.permute.xlu0 %126 }
 0x169   :  { %v134_v15 = vmul.f32 %v127_v14, %v32_v1 }
 0x16b   :  { %v136_v17 = vmul.f32 %v134_v15, %v134_v15 }
 0x16c   :  { %v132_v16 = vpop.permute.xlu0 %131 }
 0x16d   :  { %v135_v18 = vmul.f32 %v132_v16, %v33_v2  ;;  %v138_v20 = vsel %vm36_vm0, %v136_v17, 0.0 }
 0x16f   :  { %v137_v19 = vmul.f32 %v135_v18, %v135_v18 }
 0x171   :  { %v139_v21 = vsel %vm36_vm0, %v137_v19, 0.0 }
 0x172   :  { %v140_v22 = vadd.f32 %v139_v21, %v138_v20 }
 0x174   :  { %v141_v23 = vrot.slane %v140_v22, 4 }
 0x176   :  { %v142_v24 = vadd.f32 %v141_v23, %v140_v22 }
 0x178   :  { %v143_v25 = vrot.slane %v142_v24, 2 }
 0x17a   :  { %v144_v26 = vadd.f32 %v143_v25, %v142_v24 }
 0x17c   :  { %v145_v27 = vrot.slane %v144_v26, 1 }
 0x17e   :  { %v146_v28 = vadd.f32 %v145_v27, %v144_v26 }
 0x180   :  { %v147_v29 = vmul.f32 0.0625, %v146_v28 }
 0x182   :  { %v151_v30 = vadd.f32 1e-05, %v147_v29  ;;  %149 = vst.msk [vmem:[#allocation6] sm:$0x1] %vm148_vm1, %v147_v29 }
 0x183   :  { %269 = shalt.err (!%p266_p9)
}
 0x184   :  { %194 = dma.vmem_to_hbm [thread:$0]  %s192_s22, 16, %s367_s4, [#allocation7]   ;;  %236 = vrsqrt.f32 %v151_v30  ;;  %v155_v31 = vlaneseq  ;;  %v150_v33 = vld [vmem:[%s364_s1] sm:$0x1] }
 0x185   :  { %v206_v38 = vld [vmem:[%s365_s2] ss:$0 sm:$0xff]  ;;  %s310_s5 = smov [#allocation5]  }
 0x186   :  { %v156_v32 = vshrl.u32 %v155_v31, 7  ;;  %s178_s6 = sshll.u32 %s310_s5, 4  ;;  %s179_s6 = int_to_ptr.vmem [resolvable:$true] %s178_s6 }
 0x187   :  { %s278_s1 = scalar_lea.vmem %s179_s6, 256  ;;  %p283_p11 = scmp.lt.s32.totalorder %s179_s6, %s179_s6 }
 0x188   :  { %v157_v34 = vsub.s32 0, %v156_v32  ;;  %p279_p10 = scmp.ne.s32.totalorder %s179_s6, %s278_s1  ;;  %p284_p12 = scmp.lt.s32.totalorder %s278_s1, %s278_s1 }
 0x18a   :  { %p285_p13 = por %p284_p12, %p283_p11 }
 0x18c   :  { %p286_p0 = pnand %p285_p13, %p279_p10 }
 0x191   :  { %v237_v35 = vpop.eup %236 }
 0x192   :  { %v153_v36 = vmul.f32 %v237_v35, %v150_v33 }
 0x194   :  { %v158_v37 = vrot.slane %v153_v36, %v157_v34 }
 0x196   :  { %v160_v39 = vmul.f32 %v158_v37, %v134_v15  ;;  %v161_v40 = vmul.f32 %v158_v37, %v135_v18 }
 0x198   :  { %v169_v41 = vadd.f32 %v206_v38, %v160_v39  ;;  %v170_v42 = vadd.f32 %v206_v38, %v161_v40 }
 0x19a   :  { %171 = vst.msk [vmem:[#allocation5] sm:$0xff] %vm36_vm0, %v169_v41  ;;  %172 = vst.msk [vmem:[#allocation5 + $0x8] sm:$0xff] %vm36_vm0, %v170_v42 }
 0x19b   :  { %289 = shalt.err (!%p286_p0)
}
 0x19c   :  { %184 = dma.vmem_to_hbm [thread:$0]  %s179_s6, 256, %s366_s3, [#allocation4], %s305_s18, %s305_s18, %s306_s19  }
 0x19d   :  { %300 = dma.done.wait [#allocation4], 256  }
 0x19e   :  { %301 = vsyncadd [#allocation4], 4294967040 }
 0x19f   :  { %302 = dma.done.wait [#allocation7], 16  }
 0x1a0   :  { %303 = vsyncadd [#allocation7], 4294967280 }
 0x1a1   :  { %201 = vsyncpa [#allocation3], 1 }
 0x1a2   :  { %202 = vsyncpa [#allocation4], 1 }
 0x1a3   :  { %203 = vsyncpa [#allocation7], 1 }

</bundles_post_ra>
